<compile_context>
chip_gen: v6e
topology: v6e:2x2x1
jax: 0.10.0
libtpu: 0.0.40
codegen_flags: <defaults>
</compile_context>

<pallas_src>
import functools
import math

import jax
import jax.numpy as jnp
from jax.experimental import pallas as pl
from jax.experimental.pallas import tpu as pltpu

_NEG_BIG = -1e30                 # bias padding so padded softmax lanes get ~0 probability
_STREAM_VMEM_BUDGET = 24 << 20   # double-buffered streaming-window budget (v7x-safe)
_VMEM_LIMIT_FLOOR = 32 << 20     # always raise above v5e's 16 MiB scoped default
_VMEM_LIMIT_CAP = 48 << 20       # stay comfortably below v7x's 64 MiB physical VMEM


def _dhidden_into(top_ref, w_lat_ref, b_lat_ref, dh_ref):
    """dhidden = tanh(latent_in(top_level)); independent of the streamed sum."""
    dh_ref[...] = jnp.tanh(
        jnp.dot(top_ref[...], w_lat_ref[...],
                preferred_element_type=jnp.float32) + b_lat_ref[...])


def _epilogue_into(s_dense, inv_len_ref, w_theta_ref, b_theta_ref,
                   w_t2f_ref, w_t2v_ref, fold_ref,
                   ptheta_ref, tinput_ref, tdi_ref, avg_ref):
    """Tiny MXU epilogue on the lane-dense time sum s_dense: [B, G*H]."""
    # enc_theta = mean_t(theta_layer(enc)); both the 1/T factor and the
    # G-group lane fold are pre-baked into w_theta_ref ([G*H, Pp], scaled).
    enc_theta = jnp.dot(s_dense, w_theta_ref[...],
                        preferred_element_type=jnp.float32) + b_theta_ref[...]

    # softmax over templates (padded lanes carry a -1e30 bias -> prob ~0);
    # denominator reciprocal goes to the EUP slot (approx).
    m = jnp.max(enc_theta, axis=-1, keepdims=True)
    e = jnp.exp(enc_theta - m)
    p_theta = e * pl.reciprocal(jnp.sum(e, axis=-1, keepdims=True), approx=True)
    ptheta_ref[...] = p_theta

    # template_to_frame (no bias) + tanh
    t_in = jnp.tanh(jnp.dot(p_theta, w_t2f_ref[...],
                            preferred_element_type=jnp.float32))
    tinput_ref[...] = t_in

    # template_to_vocab (no bias)
    tdi_ref[...] = jnp.dot(t_in, w_t2v_ref[...],
                           preferred_element_type=jnp.float32)

    # enc_output_avg: fold the G lane groups back to [B, Hp] on the MXU
    # (stacked identities), then scale by 1/seq_len.
    avg_ref[...] = jnp.dot(s_dense, fold_ref[...],
                           preferred_element_type=jnp.float32) * inv_len_ref[...]


def _revup_head_kernel(single_step,
                       enc_ref, inv_len_ref, top_ref,
                       w_theta_ref, b_theta_ref, w_t2f_ref, w_t2v_ref,
                       w_lat_ref, b_lat_ref, fold_ref,
                       ptheta_ref, tinput_ref, tdi_ref, avg_ref, dh_ref,
                       sum_acc):
    if single_step:
        # Whole (lane-dense) enc_output window fits one VMEM block: no grid
        # accumulator / pl.when gating needed.
        _dhidden_into(top_ref, w_lat_ref, b_lat_ref, dh_ref)
        s = jnp.sum(enc_ref[...].astype(jnp.float32), axis=1)        # [B, G*H]
        _epilogue_into(s, inv_len_ref, w_theta_ref, b_theta_ref,
                       w_t2f_ref, w_t2v_ref, fold_ref,
                       ptheta_ref, tinput_ref, tdi_ref, avg_ref)
        return

    t = pl.program_id(0)

    @pl.when(t == 0)
    def _():
        sum_acc[...] = jnp.zeros_like(sum_acc)
        # Hoisted off the serial tail: hides under in-flight enc DMAs.
        _dhidden_into(top_ref, w_lat_ref, b_lat_ref, dh_ref)

    # Streamed time reduction over a lane-dense [B, tG, G*H] tile (f32 accum).
    sum_acc[...] += jnp.sum(enc_ref[...].astype(jnp.float32), axis=1)

    @pl.when(t == pl.num_programs(0) - 1)
    def _():
        _epilogue_into(sum_acc[...], inv_len_ref, w_theta_ref, b_theta_ref,
                       w_t2f_ref, w_t2v_ref, fold_ref,
                       ptheta_ref, tinput_ref, tdi_ref, avg_ref)


def _pad_lanes(n):
    return max(128, ((n + 127) // 128) * 128)


def _round_up(x, m):
    return ((x + m - 1) // m) * m


def revup_head(enc_output, seq_lens, top_level, params, *, layers, dec_hsize):
    """Fused RevUp head.  params use PyTorch Linear layout [out_features, in_features]."""
    f32 = jnp.float32
    B, T, H = enc_output.shape
    P = params["w_theta"].shape[0]      # template
    F = params["w_t2f"].shape[0]        # frame_max
    V = params["w_t2v"].shape[0]        # vocab size
    LD = params["w_lat"].shape[0]       # layers * dec_hsize
    Din = params["w_lat"].shape[1]      # latent_dim

    Pp, Fp, Vp, LDp, Hp = (_pad_lanes(n) for n in (P, F, V, LD, H))

    # ---- lane-densify the stream: group G timesteps so G*H is a 128-multiple ----
    G = 128 // math.gcd(H, 128)
    HG = G * H

    # ---- pre-transpose ([in, out]), lane-pad, and pre-fold constants ------------
    # theta weight is tiled G times along the input dim (so the lane-dense sum can
    # be contracted directly) and pre-scaled by 1/T (no in-kernel scalar, no
    # retrace on T).
    w_theta_t = jnp.zeros((H, Pp), f32).at[:, :P].set(params["w_theta"].T.astype(f32))
    w_theta_d = jnp.tile(w_theta_t, (G, 1)) * (1.0 / T)
    b_theta = jnp.full((1, Pp), _NEG_BIG, f32).at[:, :P].set(params["b_theta"].astype(f32))
    w_t2f = jnp.zeros((Pp, Fp), f32).at[:P, :F].set(params["w_t2f"].T.astype(f32))
    w_t2v = jnp.zeros((Fp, Vp), f32).at[:F, :V].set(params["w_t2v"].T.astype(f32))
    w_lat = jnp.zeros((Din, LDp), f32).at[:, :LD].set(params["w_lat"].T.astype(f32))
    b_lat = jnp.zeros((1, LDp), f32).at[:, :LD].set(params["b_lat"].astype(f32))
    # G stacked identities: folds the G lane groups of the dense sum back to H
    # features on the MXU (no in-kernel cross-lane relayout).
    fold_blk = jnp.zeros((H, Hp), f32).at[:, :H].set(jnp.eye(H, dtype=f32))
    fold_mat = jnp.tile(fold_blk, (G, 1))

    inv_len = (1.0 / seq_lens.astype(f32)).reshape(B, 1)
    top_level = top_level.astype(f32)

    # ---- regroup enc_output [B,T,H] -> [B,Tg,G*H] (contiguous reshape; native dtype) ----
    eb = jnp.dtype(enc_output.dtype).itemsize
    Tg = -(-T // G)
    if Tg * G != T:
        enc_output = jnp.pad(enc_output, ((0, 0), (0, Tg * G - T), (0, 0)))
    enc_g = enc_output.reshape(B, Tg, HG)

    # ---- pick the time-group tile from the VMEM byte budget ---------------------
    # Subtract the double-buffered constant blocks and outputs first so a large
    # vocab weight cannot silently blow the budget.
    const_bytes = 4 * int(w_theta_d.size + b_theta.size + w_t2f.size + w_t2v.size
                          + w_lat.size + b_lat.size + fold_mat.size
                          + inv_len.size + top_level.size)
    out_bytes = 4 * B * (Pp + Fp + Vp + Hp + LDp)
    stream_budget = max(2 << 20, _STREAM_VMEM_BUDGET - 2 * const_bytes - 2 * out_bytes)
    tG_cap = max(16, (stream_budget // (2 * B * HG * eb)) // 16 * 16)
    tG = min(_round_up(Tg, 16), tG_cap)      # multiple of 16: f32 & bf16 sublane tiles
    n_t = -(-Tg // tG)
    if n_t * tG != Tg:
        enc_g = jnp.pad(enc_g, ((0, 0), (0, n_t * tG - Tg), (0, 0)))  # zeros: sum unchanged
    single_step = (n_t == 1)

    def const2d(x):
        return pl.BlockSpec(x.shape, lambda t: (0, 0))

    out_shapes = (
        jax.ShapeDtypeStruct((B, Pp), f32),    # p_theta_sampled   (lane-padded)
        jax.ShapeDtypeStruct((B, Fp), f32),    # template_input    (lane-padded)
        jax.ShapeDtypeStruct((B, Vp), f32),    # template_decode   (lane-padded)
        jax.ShapeDtypeStruct((B, Hp), f32),    # enc_output_avg    (lane-padded)
        jax.ShapeDtypeStruct((B, LDp), f32),   # dhidden flat      (lane-padded)
    )
    out_specs = tuple(pl.BlockSpec(s.shape, lambda t: (0, 0)) for s in out_shapes)

    grid_spec = pltpu.PrefetchScalarGridSpec(
        num_scalar_prefetch=0,
        grid=(n_t,),
        in_specs=[pl.BlockSpec((B, tG, HG), lambda t: (0, t, 0)),
                  const2d(inv_len), const2d(top_level),
                  const2d(w_theta_d), const2d(b_theta),
                  const2d(w_t2f), const2d(w_t2v),
                  const2d(w_lat), const2d(b_lat), const2d(fold_mat)],
        out_specs=out_specs,
        scratch_shapes=[pltpu.VMEM((B, HG), f32)],   # unused in single-step mode (1 KiB)
    )

    vmem_limit = int(min(_VMEM_LIMIT_CAP,
                         max(_VMEM_LIMIT_FLOOR,
                             2 * B * tG * HG * eb + 2 * const_bytes
                             + 2 * out_bytes + 4 * B * HG + (8 << 20))))

    flops = (2 * B * n_t * tG * HG
             + 2 * B * (HG * Pp + Pp * Fp + Fp * Vp + Din * LDp + HG * Hp))
    bytes_accessed = eb * B * n_t * tG * HG + const_bytes + out_bytes
    cost = pl.CostEstimate(flops=int(flops),
                           transcendentals=int(B * (Pp + Fp + LDp)),
                           bytes_accessed=int(bytes_accessed))

    fn = pl.pallas_call(
        functools.partial(_revup_head_kernel, single_step),
        out_shape=out_shapes,
        grid_spec=grid_spec,
        compiler_params=pltpu.CompilerParams(
            dimension_semantics=("arbitrary",),      # T is a reduction axis
            vmem_limit_bytes=vmem_limit),
        cost_estimate=cost,
    )

    p_theta_p, t_in_p, tdi_p, avg_p, dh_p = fn(
        enc_g, inv_len, top_level,
        w_theta_d, b_theta, w_t2f, w_t2v, w_lat, b_lat, fold_mat)

    # Strip lane padding; .view(layers, B, dec_hsize) matches the PyTorch
    # row-major reinterpretation of the [B, layers*dec_hsize] tensor.
    p_theta = p_theta_p[:, :P]
    t_input = t_in_p[:, :F]
    tdi = tdi_p[:, :V]
    avg = avg_p[:, :H]
    dhidden = dh_p[:, :LD].reshape(layers, B, dec_hsize)
    return p_theta, t_input, tdi, avg, dhidden


def _uniform(key, shape, fan_in):
    bound = 1.0 / (fan_in ** 0.5)
    return jax.random.uniform(key, shape, jnp.float32, -bound, bound)


if __name__ == "__main__":
    # Small config consistent with the module's __init__:
    B, T = 2, 8
    LAYERS = 2
    ENC_H = 16
    BIDIR = True
    DEC_H = 2 * ENC_H if BIDIR else ENC_H        # 32
    H_ENC_OUT = LAYERS * ENC_H                   # theta_layer input dim = 32
    TEMPLATE = 8
    FRAME_MAX = 16
    VOCAB = 64
    LATENT_DIM = 32

    key = jax.random.PRNGKey(0)
    keys = jax.random.split(key, 10)

    # Deterministic "pretend" encoder / latent outputs (external sub-modules).
    enc_output = jax.random.normal(keys[0], (B, T, H_ENC_OUT), jnp.float32)
    seq_lens = jnp.array([T, T - 2], dtype=jnp.int32)
    top_level = jax.random.normal(keys[1], (B, LATENT_DIM), jnp.float32)

    # Parameters (PyTorch Linear layout: [out_features, in_features]).
    params = {
        "w_theta": _uniform(keys[2], (TEMPLATE, LAYERS * ENC_H), LAYERS * ENC_H),
        "b_theta": _uniform(keys[3], (TEMPLATE,), LAYERS * ENC_H),
        "w_t2f":   _uniform(keys[4], (FRAME_MAX, TEMPLATE), TEMPLATE),
        "w_t2v":   _uniform(keys[5], (VOCAB, FRAME_MAX), FRAME_MAX),
        "w_lat":   _uniform(keys[6], (LAYERS * DEC_H, LATENT_DIM), LATENT_DIM),
        "b_lat":   _uniform(keys[7], (LAYERS * DEC_H,), LATENT_DIM),
    }

    p_theta, t_input, tdi, avg, dhidden = jax.block_until_ready(
        revup_head(enc_output, seq_lens, top_level, params,
                   layers=LAYERS, dec_hsize=DEC_H)
    )

    # Pure-JAX reference (original, un-commuted math) for a sanity check.
    ref_theta = jnp.mean(
        jnp.einsum("bth,ph->btp", enc_output, params["w_theta"]) + params["b_theta"],
        axis=1)
    ref_p = jax.nn.softmax(ref_theta, axis=-1)
    ref_tin = jnp.tanh(ref_p @ params["w_t2f"].T)
    ref_tdi = ref_tin @ params["w_t2v"].T
    ref_avg = jnp.sum(enc_output, axis=1) / seq_lens.astype(jnp.float32)[:, None]
    ref_dh = jnp.tanh(top_level @ params["w_lat"].T + params["b_lat"]).reshape(
        LAYERS, B, DEC_H)

    assert p_theta.shape == (B, TEMPLATE)
    assert t_input.shape == (B, FRAME_MAX)
    assert tdi.shape == (B, VOCAB)
    assert avg.shape == (B, H_ENC_OUT)
    assert dhidden.shape == (LAYERS, B, DEC_H)

    # Exact-math paths: tight tolerance.
    assert jnp.allclose(avg, ref_avg, atol=1e-4, rtol=1e-4)
    assert jnp.allclose(dhidden, ref_dh, atol=1e-4, rtol=1e-4)
    # Softmax path uses the EUP approximate reciprocal (perf review item);
    # tolerance loosened only to cover that single approximation
    # (set approx=False in _epilogue_into for exact division).
    assert jnp.allclose(p_theta, ref_p, atol=1e-2, rtol=1e-2)
    assert jnp.allclose(t_input, ref_tin, atol=1e-2, rtol=1e-2)
    assert jnp.allclose(tdi, ref_tdi, atol=1e-2, rtol=1e-2)
    assert jnp.allclose(jnp.sum(p_theta, axis=-1), 1.0, atol=5e-3)

    print("KERNEL_OK")
</pallas_src>

<mosaic_0001>
module attributes {stable_mosaic.version = 11 : i64} {
  func.func @_revup_head_kernel(%arg0: i32, %arg1: memref<2x16x128xf32, #tpu.memory_space<vmem>>, %arg2: memref<2x1xf32, #tpu.memory_space<vmem>>, %arg3: memref<2x32xf32, #tpu.memory_space<vmem>>, %arg4: memref<128x128xf32, #tpu.memory_space<vmem>>, %arg5: memref<1x128xf32, #tpu.memory_space<vmem>>, %arg6: memref<128x128xf32, #tpu.memory_space<vmem>>, %arg7: memref<128x128xf32, #tpu.memory_space<vmem>>, %arg8: memref<32x128xf32, #tpu.memory_space<vmem>>, %arg9: memref<1x128xf32, #tpu.memory_space<vmem>>, %arg10: memref<128x128xf32, #tpu.memory_space<vmem>>, %arg11: memref<2x128xf32, #tpu.memory_space<vmem>>, %arg12: memref<2x128xf32, #tpu.memory_space<vmem>>, %arg13: memref<2x128xf32, #tpu.memory_space<vmem>>, %arg14: memref<2x128xf32, #tpu.memory_space<vmem>>, %arg15: memref<2x128xf32, #tpu.memory_space<vmem>>, %arg16: memref<2x128xf32, #tpu.memory_space<vmem>>) attributes {dimension_semantics = [#tpu.dimension_semantics<arbitrary>], iteration_bounds = array<i64: 1>, scalar_prefetch = 0 : i64, scratch_operands = 1 : i64, tpu.core_type = #tpu.core_type<tc>, window_params = [{transform_indices = @transform_0, window_bounds = array<i64: 2, 16, 128>}, {pipeline_mode = #tpu.pipeline_mode<synchronous>, transform_indices = @transform_1, window_bounds = array<i64: 2, 1>}, {pipeline_mode = #tpu.pipeline_mode<synchronous>, transform_indices = @transform_2, window_bounds = array<i64: 2, 32>}, {pipeline_mode = #tpu.pipeline_mode<synchronous>, transform_indices = @transform_3, window_bounds = array<i64: 128, 128>}, {pipeline_mode = #tpu.pipeline_mode<synchronous>, transform_indices = @transform_4, window_bounds = array<i64: 1, 128>}, {pipeline_mode = #tpu.pipeline_mode<synchronous>, transform_indices = @transform_5, window_bounds = array<i64: 128, 128>}, {pipeline_mode = #tpu.pipeline_mode<synchronous>, transform_indices = @transform_6, window_bounds = array<i64: 128, 128>}, {pipeline_mode = #tpu.pipeline_mode<synchronous>, transform_indices = @transform_7, window_bounds = array<i64: 32, 128>}, {pipeline_mode = #tpu.pipeline_mode<synchronous>, transform_indices = @transform_8, window_bounds = array<i64: 1, 128>}, {pipeline_mode = #tpu.pipeline_mode<synchronous>, transform_indices = @transform_9, window_bounds = array<i64: 128, 128>}, {pipeline_mode = #tpu.pipeline_mode<synchronous>, transform_indices = @transform_10, window_bounds = array<i64: 2, 128>}, {pipeline_mode = #tpu.pipeline_mode<synchronous>, transform_indices = @transform_11, window_bounds = array<i64: 2, 128>}, {pipeline_mode = #tpu.pipeline_mode<synchronous>, transform_indices = @transform_12, window_bounds = array<i64: 2, 128>}, {pipeline_mode = #tpu.pipeline_mode<synchronous>, transform_indices = @transform_13, window_bounds = array<i64: 2, 128>}, {pipeline_mode = #tpu.pipeline_mode<synchronous>, transform_indices = @transform_14, window_bounds = array<i64: 2, 128>}]} {
    %c0 = arith.constant 0 : index
    %c0_0 = arith.constant 0 : index
    %0 = vector.load %arg3[%c0, %c0_0] : memref<2x32xf32, #tpu.memory_space<vmem>>, vector<2x32xf32>
    %c0_1 = arith.constant 0 : index
    %c0_2 = arith.constant 0 : index
    %1 = vector.load %arg8[%c0_1, %c0_2] : memref<32x128xf32, #tpu.memory_space<vmem>>, vector<32x128xf32>
    %cst = arith.constant dense<0.000000e+00> : vector<2x128xf32>
    %2 = tpu.matmul %0, %1, %cst {dimension_numbers = #tpu.dot_dimension_numbers<[1], [0], [0], [1], [0, 0, 1, 1], [], []>} : vector<2x32xf32>, vector<32x128xf32>, vector<2x128xf32> -> vector<2x128xf32>
    %c0_3 = arith.constant 0 : index
    %c0_4 = arith.constant 0 : index
    %3 = vector.load %arg9[%c0_3, %c0_4] : memref<1x128xf32, #tpu.memory_space<vmem>>, vector<1x128xf32>
    %4 = vector.broadcast %3 : vector<1x128xf32> to vector<2x128xf32>
    %5 = arith.addf %2, %4 : vector<2x128xf32>
    %6 = math.tanh %5 : vector<2x128xf32>
    %c0_5 = arith.constant 0 : index
    %c0_6 = arith.constant 0 : index
    %7 = vector.load %arg15[%c0_5, %c0_6] : memref<2x128xf32, #tpu.memory_space<vmem>>, vector<2x128xf32>
    tpu.vector_store %arg15[%c0_5, %c0_6], %6 {strides = array<i32>} : memref<2x128xf32, #tpu.memory_space<vmem>>, vector<2x128xf32>,
    %c0_7 = arith.constant 0 : index
    %c0_8 = arith.constant 0 : index
    %c0_9 = arith.constant 0 : index
    %8 = vector.load %arg1[%c0_7, %c0_8, %c0_9] : memref<2x16x128xf32, #tpu.memory_space<vmem>>, vector<2x16x128xf32>
    %cst_10 = arith.constant dense<0.000000e+00> : vector<2x128xf32>
    %9 = vector.multi_reduction <add>, %8, %cst_10 [1] : vector<2x16x128xf32> to vector<2x128xf32>
    %c0_11 = arith.constant 0 : index
    %c0_12 = arith.constant 0 : index
    %10 = vector.load %arg4[%c0_11, %c0_12] : memref<128x128xf32, #tpu.memory_space<vmem>>, vector<128x128xf32>
    %cst_13 = arith.constant dense<0.000000e+00> : vector<2x128xf32>
    %11 = tpu.matmul %9, %10, %cst_13 {dimension_numbers = #tpu.dot_dimension_numbers<[1], [0], [0], [1], [0, 0, 1, 1], [], []>} : vector<2x128xf32>, vector<128x128xf32>, vector<2x128xf32> -> vector<2x128xf32>
    %c0_14 = arith.constant 0 : index
    %c0_15 = arith.constant 0 : index
    %12 = vector.load %arg5[%c0_14, %c0_15] : memref<1x128xf32, #tpu.memory_space<vmem>>, vector<1x128xf32>
    %13 = vector.broadcast %12 : vector<1x128xf32> to vector<2x128xf32>
    %14 = arith.addf %11, %13 : vector<2x128xf32>
    %cst_16 = arith.constant dense<0xFF800000> : vector<2xf32>
    %15 = vector.multi_reduction <maximumf>, %14, %cst_16 [1] : vector<2x128xf32> to vector<2xf32>
    %16 = vector.shape_cast %15 : vector<2xf32> to vector<2x1xf32>
    %17 = vector.broadcast %16 : vector<2x1xf32> to vector<2x128xf32>
    %18 = arith.subf %14, %17 : vector<2x128xf32>
    %19 = math.exp %18 : vector<2x128xf32>
    %cst_17 = arith.constant dense<0.000000e+00> : vector<2xf32>
    %20 = vector.multi_reduction <add>, %19, %cst_17 [1] : vector<2x128xf32> to vector<2xf32>
    %21 = vector.shape_cast %20 : vector<2xf32> to vector<2x1xf32>
    %22 = tpu.reciprocal %21 {approx = true} : vector<2x1xf32> -> vector<2x1xf32>
    %23 = vector.broadcast %22 : vector<2x1xf32> to vector<2x128xf32>
    %24 = arith.mulf %19, %23 : vector<2x128xf32>
    %c0_18 = arith.constant 0 : index
    %c0_19 = arith.constant 0 : index
    %25 = vector.load %arg11[%c0_18, %c0_19] : memref<2x128xf32, #tpu.memory_space<vmem>>, vector<2x128xf32>
    tpu.vector_store %arg11[%c0_18, %c0_19], %24 {strides = array<i32>} : memref<2x128xf32, #tpu.memory_space<vmem>>, vector<2x128xf32>,
    %c0_20 = arith.constant 0 : index
    %c0_21 = arith.constant 0 : index
    %26 = vector.load %arg6[%c0_20, %c0_21] : memref<128x128xf32, #tpu.memory_space<vmem>>, vector<128x128xf32>
    %cst_22 = arith.constant dense<0.000000e+00> : vector<2x128xf32>
    %27 = tpu.matmul %24, %26, %cst_22 {dimension_numbers = #tpu.dot_dimension_numbers<[1], [0], [0], [1], [0, 0, 1, 1], [], []>} : vector<2x128xf32>, vector<128x128xf32>, vector<2x128xf32> -> vector<2x128xf32>
    %28 = math.tanh %27 : vector<2x128xf32>
    %c0_23 = arith.constant 0 : index
    %c0_24 = arith.constant 0 : index
    %29 = vector.load %arg12[%c0_23, %c0_24] : memref<2x128xf32, #tpu.memory_space<vmem>>, vector<2x128xf32>
    tpu.vector_store %arg12[%c0_23, %c0_24], %28 {strides = array<i32>} : memref<2x128xf32, #tpu.memory_space<vmem>>, vector<2x128xf32>,
    %c0_25 = arith.constant 0 : index
    %c0_26 = arith.constant 0 : index
    %30 = vector.load %arg7[%c0_25, %c0_26] : memref<128x128xf32, #tpu.memory_space<vmem>>, vector<128x128xf32>
    %cst_27 = arith.constant dense<0.000000e+00> : vector<2x128xf32>
    %31 = tpu.matmul %28, %30, %cst_27 {dimension_numbers = #tpu.dot_dimension_numbers<[1], [0], [0], [1], [0, 0, 1, 1], [], []>} : vector<2x128xf32>, vector<128x128xf32>, vector<2x128xf32> -> vector<2x128xf32>
    %c0_28 = arith.constant 0 : index
    %c0_29 = arith.constant 0 : index
    %32 = vector.load %arg13[%c0_28, %c0_29] : memref<2x128xf32, #tpu.memory_space<vmem>>, vector<2x128xf32>
    tpu.vector_store %arg13[%c0_28, %c0_29], %31 {strides = array<i32>} : memref<2x128xf32, #tpu.memory_space<vmem>>, vector<2x128xf32>,
    %c0_30 = arith.constant 0 : index
    %c0_31 = arith.constant 0 : index
    %33 = vector.load %arg10[%c0_30, %c0_31] : memref<128x128xf32, #tpu.memory_space<vmem>>, vector<128x128xf32>
    %cst_32 = arith.constant dense<0.000000e+00> : vector<2x128xf32>
    %34 = tpu.matmul %9, %33, %cst_32 {dimension_numbers = #tpu.dot_dimension_numbers<[1], [0], [0], [1], [0, 0, 1, 1], [], []>} : vector<2x128xf32>, vector<128x128xf32>, vector<2x128xf32> -> vector<2x128xf32>
    %c0_33 = arith.constant 0 : index
    %c0_34 = arith.constant 0 : index
    %35 = vector.load %arg2[%c0_33, %c0_34] : memref<2x1xf32, #tpu.memory_space<vmem>>, vector<2x1xf32>
    %36 = vector.broadcast %35 : vector<2x1xf32> to vector<2x128xf32>
    %37 = arith.mulf %34, %36 : vector<2x128xf32>
    %c0_35 = arith.constant 0 : index
    %c0_36 = arith.constant 0 : index
    %38 = vector.load %arg14[%c0_35, %c0_36] : memref<2x128xf32, #tpu.memory_space<vmem>>, vector<2x128xf32>
    tpu.vector_store %arg14[%c0_35, %c0_36], %37 {strides = array<i32>} : memref<2x128xf32, #tpu.memory_space<vmem>>, vector<2x128xf32>,
    return
  }
  func.func @transform_0(%arg0: i32) -> (i32, i32, i32) {
    %c0_i32 = arith.constant 0 : i32
    %c0_i32_0 = arith.constant 0 : i32
    %c0_i32_1 = arith.constant 0 : i32
    return %c0_i32, %arg0, %c0_i32_0 : i32, i32, i32
  }
  func.func @transform_1(%arg0: i32) -> (i32, i32) {
    %c0_i32 = arith.constant 0 : i32
    %c0_i32_0 = arith.constant 0 : i32
    %c0_i32_1 = arith.constant 0 : i32
    return %c0_i32, %c0_i32_0 : i32, i32
  }
  func.func @transform_2(%arg0: i32) -> (i32, i32) {
    %c0_i32 = arith.constant 0 : i32
    %c0_i32_0 = arith.constant 0 : i32
    %c0_i32_1 = arith.constant 0 : i32
    return %c0_i32, %c0_i32_0 : i32, i32
  }
  func.func @transform_3(%arg0: i32) -> (i32, i32) {
    %c0_i32 = arith.constant 0 : i32
    %c0_i32_0 = arith.constant 0 : i32
    %c0_i32_1 = arith.constant 0 : i32
    return %c0_i32, %c0_i32_0 : i32, i32
  }
  func.func @transform_4(%arg0: i32) -> (i32, i32) {
    %c0_i32 = arith.constant 0 : i32
    %c0_i32_0 = arith.constant 0 : i32
    %c0_i32_1 = arith.constant 0 : i32
    return %c0_i32, %c0_i32_0 : i32, i32
  }
  func.func @transform_5(%arg0: i32) -> (i32, i32) {
    %c0_i32 = arith.constant 0 : i32
    %c0_i32_0 = arith.constant 0 : i32
    %c0_i32_1 = arith.constant 0 : i32
    return %c0_i32, %c0_i32_0 : i32, i32
  }
  func.func @transform_6(%arg0: i32) -> (i32, i32) {
    %c0_i32 = arith.constant 0 : i32
    %c0_i32_0 = arith.constant 0 : i32
    %c0_i32_1 = arith.constant 0 : i32
    return %c0_i32, %c0_i32_0 : i32, i32
  }
  func.func @transform_7(%arg0: i32) -> (i32, i32) {
    %c0_i32 = arith.constant 0 : i32
    %c0_i32_0 = arith.constant 0 : i32
    %c0_i32_1 = arith.constant 0 : i32
    return %c0_i32, %c0_i32_0 : i32, i32
  }
  func.func @transform_8(%arg0: i32) -> (i32, i32) {
    %c0_i32 = arith.constant 0 : i32
    %c0_i32_0 = arith.constant 0 : i32
    %c0_i32_1 = arith.constant 0 : i32
    return %c0_i32, %c0_i32_0 : i32, i32
  }
  func.func @transform_9(%arg0: i32) -> (i32, i32) {
    %c0_i32 = arith.constant 0 : i32
    %c0_i32_0 = arith.constant 0 : i32
    %c0_i32_1 = arith.constant 0 : i32
    return %c0_i32, %c0_i32_0 : i32, i32
  }
  func.func @transform_10(%arg0: i32) -> (i32, i32) {
    %c0_i32 = arith.constant 0 : i32
    %c0_i32_0 = arith.constant 0 : i32
    %c0_i32_1 = arith.constant 0 : i32
    return %c0_i32, %c0_i32_0 : i32, i32
  }
  func.func @transform_11(%arg0: i32) -> (i32, i32) {
    %c0_i32 = arith.constant 0 : i32
    %c0_i32_0 = arith.constant 0 : i32
    %c0_i32_1 = arith.constant 0 : i32
    return %c0_i32, %c0_i32_0 : i32, i32
  }
  func.func @transform_12(%arg0: i32) -> (i32, i32) {
    %c0_i32 = arith.constant 0 : i32
    %c0_i32_0 = arith.constant 0 : i32
    %c0_i32_1 = arith.constant 0 : i32
    return %c0_i32, %c0_i32_0 : i32, i32
  }
  func.func @transform_13(%arg0: i32) -> (i32, i32) {
    %c0_i32 = arith.constant 0 : i32
    %c0_i32_0 = arith.constant 0 : i32
    %c0_i32_1 = arith.constant 0 : i32
    return %c0_i32, %c0_i32_0 : i32, i32
  }
  func.func @transform_14(%arg0: i32) -> (i32, i32) {
    %c0_i32 = arith.constant 0 : i32
    %c0_i32_0 = arith.constant 0 : i32
    %c0_i32_1 = arith.constant 0 : i32
    return %c0_i32, %c0_i32_0 : i32, i32
  }
}

</mosaic_0001>

<bundles_post_ra>
// kernel: tpu_custom_call.1
= control target key start
LH: loop header
LB: loop body
LE: loop exit
PB: predicated region body
PF: predicated region fallthrough
CT: control target
= control target key end

     0   :  { %20 = vsyncpa [#allocation4], 0  ;;  %s1412_s0 = inlined_call_operand.hbm [shape: f32[2,16,128], index: 0, kind: input, shape index: {}]   ;;  %s1413_s1 = inlined_call_operand.vmem [shape: f32[2,1], index: 1, kind: input, shape index: {}]   ;;  %s1414_s2 = inlined_call_operand.vmem [shape: f32[2,32], index: 2, kind: input, shape index: {}]   ;;  %s1415_s3 = inlined_call_operand.hbm [shape: f32[128,128], index: 3, kind: input, shape index: {}]   ;;  %s1416_s4 = inlined_call_operand.vmem [shape: f32[1,128], index: 4, kind: input, shape index: {}]   ;;  %s1417_s5 = inlined_call_operand.hbm [shape: f32[128,128], index: 5, kind: input, shape index: {}]   ;;  %s1418_s6 = inlined_call_operand.hbm [shape: f32[128,128], index: 6, kind: input, shape index: {}]   ;;  %s1419_s7 = inlined_call_operand.hbm [shape: f32[32,128], index: 7, kind: input, shape index: {}]   ;;  %s1420_s8 = inlined_call_operand.vmem [shape: f32[1,128], index: 8, kind: input, shape index: {}]   ;;  %s1421_s9 = inlined_call_operand.hbm [shape: f32[128,128], index: 9, kind: input, shape index: {}]   ;;  %s1422_s10 = inlined_call_operand.hbm [shape: f32[2,128], index: 10, kind: output, shape index: {0}]   ;;  %s1423_s11 = inlined_call_operand.hbm [shape: f32[2,128], index: 11, kind: output, shape index: {1}]   ;;  %s1424_s12 = inlined_call_operand.hbm [shape: f32[2,128], index: 12, kind: output, shape index: {2}]   ;;  %s1425_s13 = inlined_call_operand.hbm [shape: f32[2,128], index: 13, kind: output, shape index: {3}]   ;;  %s1426_s14 = inlined_call_operand.hbm [shape: f32[2,128], index: 14, kind: output, shape index: {4}]  }
   0x1   :  { %21 = vsyncpa [#allocation7], 0 }
   0x2   :  { %22 = vsyncpa [#allocation10], 0 }
   0x3   :  { %23 = vsyncpa [#allocation13], 0 }
   0x4   :  { %24 = vsyncpa [#allocation5], 0 }
   0x5   :  { %25 = vsyncpa [#allocation16], 0 }
   0x6   :  { %26 = vsyncpa [#allocation19], 0  ;;  %s1170_s29 = smov [#allocation6]   ;;  %s1171_s15 = smov [#allocation9]  }
   0x7   :  { %s48_s30 = sshll.u32 %s1170_s29, 4  ;;  %s74_s16 = sshll.u32 %s1171_s15, 4  ;;  %s49_s30 = int_to_ptr.vmem [resolvable:$true] %s48_s30  ;;  %s75_s16 = int_to_ptr.vmem [resolvable:$true] %s74_s16 }
   0x8   :  { %s944_s17 = scalar_lea.vmem %s49_s30, 2048  ;;  %p949_p1 = scmp.lt.s32.totalorder %s49_s30, %s49_s30 }
   0x9   :  { %p945_p0 = scmp.ne.s32.totalorder %s49_s30, %s944_s17  ;;  %p950_p2 = scmp.lt.s32.totalorder %s944_s17, %s944_s17 }
   0xb   :  { %p951_p3 = por %p950_p2, %p949_p1 }
   0xd   :  { %p952_p4 = pnand %p951_p3, %p945_p0 }
   0xf   :  { %955 = shalt.err (!%p952_p4)
}
  0x10   :  { %s1172_s18 = smov 128   ;;  %s1173_s19 = smov 8  }
  0x11   :  { %54 = dma.hbm_to_vmem [thread:$0]  %s1415_s3, 2048, %s49_s30, [#allocation7], %s1172_s18, %s1172_s18, %s1173_s19  }
  0x12   :  { %s964_s22 = scalar_lea.vmem %s75_s16, 2048  ;;  %p969_p6 = scmp.lt.s32.totalorder %s75_s16, %s75_s16 }
  0x13   :  { %p965_p5 = scmp.ne.s32.totalorder %s75_s16, %s964_s22  ;;  %p970_p7 = scmp.lt.s32.totalorder %s964_s22, %s964_s22 }
  0x15   :  { %p971_p8 = por %p970_p7, %p969_p6 }
  0x17   :  { %p972_p9 = pnand %p971_p8, %p965_p5 }
  0x19   :  { %975 = shalt.err (!%p972_p9)
}
  0x1a   :  { %80 = dma.hbm_to_vmem [thread:$0]  %s1418_s6, 2048, %s75_s16, [#allocation10], %s1172_s18, %s1172_s18, %s1173_s19  }
  0x1b   :  { %s1174_s25 = smov [#allocation3]   ;;  %s1175_s27 = smov [#allocation8]  }
  0x1c   :  { %s32_s26 = sshll.u32 %s1174_s25, 4  ;;  %s62_s28 = sshll.u32 %s1175_s27, 4  ;;  %s33_s26 = int_to_ptr.vmem [resolvable:$true] %s32_s26  ;;  %s63_s28 = int_to_ptr.vmem [resolvable:$true] %s62_s28 }
  0x1d   :  { %s984_s3 = scalar_lea.vmem %s33_s26, 512  ;;  %p989_p11 = scmp.lt.s32.totalorder %s33_s26, %s33_s26 }
  0x1e   :  { %p985_p10 = scmp.ne.s32.totalorder %s33_s26, %s984_s3  ;;  %p990_p12 = scmp.lt.s32.totalorder %s984_s3, %s984_s3 }
  0x20   :  { %p991_p13 = por %p990_p12, %p989_p11 }
  0x22   :  { %p992_p0 = pnand %p991_p13, %p985_p10 }
  0x24   :  { %995 = shalt.err (!%p992_p0)
}
  0x25   :  { %38 = dma.hbm_to_vmem [thread:$0]  %s1412_s0, 512, %s33_s26, [#allocation4], %s1172_s18, %s1172_s18, %s1173_s19  }
  0x26   :  { %s1004_s6 = scalar_lea.vmem %s63_s28, 2048  ;;  %p1009_p2 = scmp.lt.s32.totalorder %s63_s28, %s63_s28 }
  0x27   :  { %p1005_p1 = scmp.ne.s32.totalorder %s63_s28, %s1004_s6  ;;  %p1010_p3 = scmp.lt.s32.totalorder %s1004_s6, %s1004_s6 }
  0x29   :  { %p1011_p4 = por %p1010_p3, %p1009_p2 }
  0x2b   :  { %p1012_p5 = pnand %p1011_p4, %p1005_p1 }
  0x2d   :  { %1015 = shalt.err (!%p1012_p5)
}
  0x2e   :  { %68 = dma.hbm_to_vmem [thread:$0]  %s1417_s5, 2048, %s63_s28, [#allocation7], %s1172_s18, %s1172_s18, %s1173_s19  }
  0x2f   :  { %s1176_s17 = smov [#allocation11]   ;;  %s1177_s21 = smov [#allocation12]  }
  0x30   :  { %s86_s20 = sshll.u32 %s1176_s17, 4  ;;  %s100_s22 = sshll.u32 %s1177_s21, 4  ;;  %s87_s20 = int_to_ptr.vmem [resolvable:$true] %s86_s20  ;;  %s101_s22 = int_to_ptr.vmem [resolvable:$true] %s100_s22 }
  0x31   :  { %s1024_s0 = scalar_lea.vmem %s87_s20, 512  ;;  %p1029_p7 = scmp.lt.s32.totalorder %s87_s20, %s87_s20 }
  0x32   :  { %p1025_p6 = scmp.ne.s32.totalorder %s87_s20, %s1024_s0  ;;  %p1030_p8 = scmp.lt.s32.totalorder %s1024_s0, %s1024_s0 }
  0x34   :  { %p1031_p9 = por %p1030_p8, %p1029_p7 }
  0x36   :  { %p1032_p10 = pnand %p1031_p9, %p1025_p6 }
  0x38   :  { %1035 = shalt.err (!%p1032_p10)
}
  0x39   :  { %92 = dma.hbm_to_vmem [thread:$0]  %s1419_s7, 512, %s87_s20, [#allocation10], %s1172_s18, %s1172_s18, %s1173_s19  }
  0x3a   :  { %s1044_s5 = scalar_lea.vmem %s101_s22, 2048  ;;  %p1049_p12 = scmp.lt.s32.totalorder %s101_s22, %s101_s22 }
  0x3b   :  { %p1045_p11 = scmp.ne.s32.totalorder %s101_s22, %s1044_s5  ;;  %p1050_p13 = scmp.lt.s32.totalorder %s1044_s5, %s1044_s5 }
  0x3d   :  { %p1051_p0 = por %p1050_p13, %p1049_p12 }
  0x3f   :  { %p1052_p1 = pnand %p1051_p0, %p1045_p11 }
  0x41   :  { %1055 = shalt.err (!%p1052_p1)
}
  0x42   :  { %106 = dma.hbm_to_vmem [thread:$0]  %s1421_s9, 2048, %s101_s22, [#allocation13], %s1172_s18, %s1172_s18, %s1173_s19  }
  0x43   :  { %1156 = dma.done.wait [#allocation4], 512  }
  0x44   :  { %1157 = vsyncadd [#allocation4], 4294966784 }
  0x45   :  { %1158 = dma.done.wait [#allocation7], 4096  }
  0x46   :  { %1159 = vsyncadd [#allocation7], 4294963200 }
  0x47   :  { %1160 = dma.done.wait [#allocation10], 2560  }
  0x48   :  { %1161 = vsyncadd [#allocation10], 4294964736 }
  0x49   :  { %1162 = dma.done.wait [#allocation13], 2048  }
  0x4a   :  { %1163 = vsyncadd [#allocation13], 4294965248  ;;  %v1178_v0 = vmov 0.0   ;;  %vm1179_vm0 = vmmov 0   ;;  %v246_v1 = vld [vmem:[#allocation6 + $0x78] sm:$0xff]  ;;  %v245_v2 = vld [vmem:[#allocation6 + $0x70] sm:$0xff] }
  0x4b   :  { %770 = vmatprep.subr.mxu1 %v1178_v0  ;;  %802 = vmatprep.mubr.msk.f32.mxu1 %vm1179_vm0, %v1178_v0  ;;  %v244_v3 = vld [vmem:[#allocation6 + $0x68] sm:$0xff]  ;;  %v243_v4 = vld [vmem:[#allocation6 + $0x60] sm:$0xff]  ;;  %v242_v7 = vld [vmem:[#allocation6 + $0x58] sm:$0xff]  ;;  %vm256_vm1 = vcmask 1041409   ;;  %vm329_vm2 = vcmask 1041408   ;;  %vm137_vm3 = vcmask 261120  }
  0x4c   :  { %759 = vmatprep.subr.mxu0 %v1178_v0  ;;  %767 = vmatprep.mubr.msk.f32.mxu0 %vm1179_vm0, %v1178_v0  ;;  %v213_v5 = vld [vmem:[#allocation3] sm:$0xff]  ;;  %v214_v6 = vld [vmem:[#allocation3 + $0x8] sm:$0xff]  ;;  %v215_v8 = vld [vmem:[#allocation3 + $0x10] sm:$0xff]  ;;  %s1181_s28 = smov [#allocation15]   ;;  %s1182_s29 = smov [#allocation18]  }
  0x4d   :  { %771 = vmatpush3.msra.mxu1 %v246_v1  ;;  %v216_v9 = vld [vmem:[#allocation3 + $0x18] sm:$0xff]  ;;  %v217_v10 = vadd.f32 %v214_v6, %v213_v5  ;;  %v241_v12 = vld [vmem:[#allocation6 + $0x50] sm:$0xff]  ;;  %v240_v15 = vld [vmem:[#allocation6 + $0x48] sm:$0xff]  ;;  %s627_s3 = sshll.u32 %s1181_s28, 4  ;;  %s647_s30 = sshll.u32 %s1182_s29, 4  ;;  %s628_s3 = int_to_ptr.vmem [resolvable:$true] %s627_s3  ;;  %s648_s30 = int_to_ptr.vmem [resolvable:$true] %s647_s30 }
  0x4e   :  { %772 = vmatprep.subr.mxu1 %v1178_v0  ;;  %v224_v11 = vadd.f32 %v216_v9, %v215_v8  ;;  %v239_v18 = vld [vmem:[#allocation6 + $0x40] sm:$0xff]  ;;  %v238_v21 = vld [vmem:[#allocation6 + $0x38] sm:$0xff]  ;;  %v237_v22 = vld [vmem:[#allocation6 + $0x30] sm:$0xff]  ;;  %p1061_p3 = scmp.lt.s32.totalorder %s628_s3, %s628_s3 }
  0x4f   :  { %773 = vmatpush3.msra.mxu1 %v245_v2  ;;  %v218_v13 = vrot.slane %v217_v10, 4  ;;  %v236_v25 = vld [vmem:[#allocation6 + $0x28] sm:$0xff]  ;;  %v235_v26 = vld [vmem:[#allocation6 + $0x20] sm:$0xff]  ;;  %v234_v29 = vld [vmem:[#allocation6 + $0x18] sm:$0xff] }
  0x50   :  { %774 = vmatprep.subr.mxu1 %v1178_v0  ;;  %v225_v14 = vrot.slane %v224_v11, 4  ;;  %v233_v30 = vld [vmem:[#allocation6 + $0x10] sm:$0xff]  ;;  %v232_v33 = vld [vmem:[#allocation6 + $0x8] sm:$0xff]  ;;  %v231_v34 = vld [vmem:[#allocation6] sm:$0xff] }
  0x51   :  { %775 = vmatpush3.msra.mxu1 %v244_v3  ;;  %v219_v16 = vadd.f32 %v218_v13, %v217_v10  ;;  %v685_v36 = vld [vmem:[%s1416_s4] ss:$0 sm:$0xff]  ;;  %v129_v41 = vld [vmem:[#allocation11 + $0x18] sm:$0xff]  ;;  %v128_v42 = vld [vmem:[#allocation11 + $0x10] sm:$0xff] }
  0x52   :  { %776 = vmatprep.subr.mxu1 %v1178_v0  ;;  %v226_v17 = vadd.f32 %v225_v14, %v224_v11  ;;  %760 = vmatpush3.msra.mxu0 %v129_v41  ;;  %v127_v43 = vld [vmem:[#allocation11 + $0x8] sm:$0xff]  ;;  %v126_v44 = vld [vmem:[#allocation11] sm:$0xff]  ;;  %v357_v46 = vld [vmem:[#allocation8 + $0x78] sm:$0xff] }
  0x53   :  { %777 = vmatpush3.msra.mxu1 %v243_v4  ;;  %v220_v19 = vrot.slane %v219_v16, 2  ;;  %761 = vmatprep.subr.mxu0 %v1178_v0  ;;  %v125_v45 = vld [vmem:[%s1414_s2] sm:$0x3]  ;;  %v356_v47 = vld [vmem:[#allocation8 + $0x70] sm:$0xff]  ;;  %v355_v48 = vld [vmem:[#allocation8 + $0x68] sm:$0xff] }
  0x54   :  { %778 = vmatprep.subr.mxu1 %v1178_v0  ;;  %v227_v20 = vrot.slane %v226_v17, 2  ;;  %762 = vmatpush3.msra.mxu0 %v128_v42  ;;  %v354_v49 = vld [vmem:[#allocation8 + $0x60] sm:$0xff]  ;;  %v353_v50 = vld [vmem:[#allocation8 + $0x58] sm:$0xff]  ;;  %v352_v51 = vld [vmem:[#allocation8 + $0x50] sm:$0xff] }
  0x55   :  { %779 = vmatpush3.msra.mxu1 %v242_v7  ;;  %v221_v23 = vadd.f32 %v220_v19, %v219_v16  ;;  %763 = vmatprep.subr.mxu0 %v1178_v0  ;;  %v351_v52 = vld [vmem:[#allocation8 + $0x48] sm:$0xff]  ;;  %v350_v58 = vld [vmem:[#allocation8 + $0x40] sm:$0xff]  ;;  %v349_v59 = vld [vmem:[#allocation8 + $0x38] sm:$0xff] }
  0x56   :  { %780 = vmatprep.subr.mxu1 %v1178_v0  ;;  %v228_v24 = vadd.f32 %v227_v20, %v226_v17  ;;  %764 = vmatpush3.msra.mxu0 %v127_v43  ;;  %v348_v60 = vld [vmem:[#allocation8 + $0x30] sm:$0xff]  ;;  %v347_v61 = vld [vmem:[#allocation8 + $0x28] sm:$0xff]  ;;  %v346_v62 = vld [vmem:[#allocation8 + $0x20] sm:$0xff] }
  0x57   :  { %781 = vmatpush3.msra.mxu1 %v241_v12  ;;  %v222_v27 = vrot.slane %v221_v23, 1  ;;  %765 = vmatprep.subr.mxu0 %v1178_v0  ;;  %v345_v63 = vld [vmem:[#allocation8 + $0x18] sm:$0xff]  ;;  %v344_v1 = vld [vmem:[#allocation8 + $0x10] sm:$0xff]  ;;  %v343_v2 = vld [vmem:[#allocation8 + $0x8] sm:$0xff] }
  0x58   :  { %782 = vmatprep.subr.mxu1 %v1178_v0  ;;  %v229_v28 = vrot.slane %v228_v24, 1  ;;  %766 = vmatpush3.msra.mxu0 %v126_v44  ;;  %v342_v3 = vld [vmem:[#allocation8] sm:$0xff]  ;;  %v445_v4 = vld [vmem:[#allocation9 + $0x78] sm:$0xff]  ;;  %v444_v5 = vld [vmem:[#allocation9 + $0x70] sm:$0xff] }
  0x59   :  { %783 = vmatpush3.msra.mxu1 %v240_v15  ;;  %v223_v31 = vadd.f32 %v222_v27, %v221_v23  ;;  %768 = vmatmul.mubr.msk.f32.vlgmr.msra.gmra.mxu0 %vm137_vm3, %v125_v45  ;;  %v443_v6 = vld [vmem:[#allocation9 + $0x68] sm:$0xff]  ;;  %v442_v7 = vld [vmem:[#allocation9 + $0x60] sm:$0xff]  ;;  %v441_v8 = vld [vmem:[#allocation9 + $0x58] sm:$0xff] }
  0x5a   :  { %784 = vmatprep.subr.mxu1 %v1178_v0  ;;  %v230_v32 = vadd.f32 %v229_v28, %v228_v24  ;;  %805 = vmatprep.subr.mxu0 %v1178_v0  ;;  %v440_v9 = vld [vmem:[#allocation9 + $0x50] sm:$0xff]  ;;  %v439_v10 = vld [vmem:[#allocation9 + $0x48] sm:$0xff]  ;;  %v438_v11 = vld [vmem:[#allocation9 + $0x40] sm:$0xff] }
  0x5b   :  { %785 = vmatpush3.msra.mxu1 %v239_v18  ;;  %806 = vmatpush3.msra.mxu0 %v357_v46  ;;  %v683_v12 = vld [vmem:[%s1420_s8] ss:$0 sm:$0xff]  ;;  %v532_v20 = vld [vmem:[#allocation12 + $0x78] sm:$0xff]  ;;  %v432_v42 = vld [vmem:[#allocation9 + $0x10] sm:$0xff]  ;;  %v1180_v46 = vmov 0  }
  0x5c   :  { %786 = vmatprep.subr.mxu1 %v1178_v0  ;;  %v1317_v35 = vsel %vm256_vm1, %v230_v32, %v223_v31  ;;  %837 = vmatprep.mubr.msk.f32.mxu0 %vm1179_vm0, %v1178_v0  ;;  %v529_v23 = vld [vmem:[#allocation12 + $0x60] sm:$0xff]  ;;  %v528_v24 = vld [vmem:[#allocation12 + $0x58] sm:$0xff]  ;;  %v431_v43 = vld [vmem:[#allocation9 + $0x8] sm:$0xff] }
  0x5d   :  { %787 = vmatpush3.msra.mxu1 %v238_v21  ;;  %807 = vmatprep.subr.mxu0 %v1178_v0  ;;  %v531_v21 = vld [vmem:[#allocation12 + $0x70] sm:$0xff]  ;;  %v525_v27 = vld [vmem:[#allocation12 + $0x40] sm:$0xff]  ;;  %v524_v28 = vld [vmem:[#allocation12 + $0x38] sm:$0xff] }
  0x5e   :  { %788 = vmatprep.subr.mxu1 %v1178_v0  ;;  %808 = vmatpush3.msra.mxu0 %v356_v47  ;;  %v437_v31 = vld [vmem:[#allocation9 + $0x38] sm:$0xff]  ;;  %v521_v32 = vld [vmem:[#allocation12 + $0x20] sm:$0xff] }
  0x5f   :  { %789 = vmatpush3.msra.mxu1 %v237_v22  ;;  %809 = vmatprep.subr.mxu0 %v1178_v0  ;;  %v530_v22 = vld [vmem:[#allocation12 + $0x68] sm:$0xff]  ;;  %v517_v41 = vld [vmem:[#allocation12] sm:$0xff] }
  0x60   :  { %790 = vmatprep.subr.mxu1 %v1178_v0  ;;  %810 = vmatpush3.msra.mxu0 %v355_v48  ;;  %v430_v44 = vld [vmem:[#allocation9] sm:$0xff] }
  0x61   :  { %791 = vmatpush3.msra.mxu1 %v236_v25  ;;  %811 = vmatprep.subr.mxu0 %v1178_v0  ;;  %v527_v25 = vld [vmem:[#allocation12 + $0x50] sm:$0xff]  ;;  %v603_v45 = vld [vmem:[%s1413_s1] sm:$0x3]  ;;  %s1056_s1 = scalar_lea.vmem %s628_s3, 32 }
  0x62   :  { %792 = vmatprep.subr.mxu1 %v1178_v0  ;;  %812 = vmatpush3.msra.mxu0 %v354_v49  ;;  %p1057_p2 = scmp.ne.s32.totalorder %s628_s3, %s1056_s1  ;;  %p1062_p4 = scmp.lt.s32.totalorder %s1056_s1, %s1056_s1 }
  0x63   :  { %793 = vmatpush3.msra.mxu1 %v235_v26  ;;  %813 = vmatprep.subr.mxu0 %v1178_v0  ;;  %v526_v26 = vld [vmem:[#allocation12 + $0x48] sm:$0xff] }
  0x64   :  { %794 = vmatprep.subr.mxu1 %v1178_v0  ;;  %814 = vmatpush3.msra.mxu0 %v353_v50  ;;  %p1063_p5 = por %p1062_p4, %p1061_p3 }
  0x65   :  { %795 = vmatpush3.msra.mxu1 %v234_v29  ;;  %815 = vmatprep.subr.mxu0 %v1178_v0  ;;  %v523_v29 = vld [vmem:[#allocation12 + $0x30] sm:$0xff] }
  0x66   :  { %796 = vmatprep.subr.mxu1 %v1178_v0  ;;  %816 = vmatpush3.msra.mxu0 %v352_v51  ;;  %p1064_p6 = pnand %p1063_p5, %p1057_p2 }
  0x67   :  { %797 = vmatpush3.msra.mxu1 %v233_v30  ;;  %817 = vmatprep.subr.mxu0 %v1178_v0  ;;  %v522_v30 = vld [vmem:[#allocation12 + $0x28] sm:$0xff] }
  0x68   :  { %798 = vmatprep.subr.mxu1 %v1178_v0  ;;  %818 = vmatpush3.msra.mxu0 %v351_v52 }
  0x69   :  { %799 = vmatpush3.msra.mxu1 %v232_v33  ;;  %819 = vmatprep.subr.mxu0 %v1178_v0  ;;  %v436_v33 = vld [vmem:[#allocation9 + $0x30] sm:$0xff] }
  0x6a   :  { %800 = vmatprep.subr.mxu1 %v1178_v0  ;;  %820 = vmatpush3.msra.mxu0 %v350_v58 }
  0x6b   :  { %801 = vmatpush3.msra.mxu1 %v231_v34  ;;  %821 = vmatprep.subr.mxu0 %v1178_v0  ;;  %v520_v34 = vld [vmem:[#allocation12 + $0x18] sm:$0xff] }
  0x6c   :  { %803 = vmatmul.mubr.f32.vlgmr.msra.gmra.mxu1 %v1317_v35  ;;  %840 = vmatprep.subr.mxu1 %v1178_v0 }
  0x6d   :  { %872 = vmatprep.mubr.msk.f32.mxu1 %vm1179_vm0, %v1178_v0  ;;  %822 = vmatpush3.msra.mxu0 %v349_v59 }
  0x6e   :  { %823 = vmatprep.subr.mxu0 %v1178_v0  ;;  %841 = vmatpush3.msra.mxu1 %v445_v4 }
  0x6f   :  { %824 = vmatpush3.msra.mxu0 %v348_v60  ;;  %842 = vmatprep.subr.mxu1 %v1178_v0 }
  0x70   :  { %825 = vmatprep.subr.mxu0 %v1178_v0  ;;  %843 = vmatpush3.msra.mxu1 %v444_v5 }
  0x71   :  { %826 = vmatpush3.msra.mxu0 %v347_v61  ;;  %844 = vmatprep.subr.mxu1 %v1178_v0 }
  0x72   :  { %827 = vmatprep.subr.mxu0 %v1178_v0  ;;  %845 = vmatpush3.msra.mxu1 %v443_v6 }
  0x73   :  { %828 = vmatpush3.msra.mxu0 %v346_v62  ;;  %846 = vmatprep.subr.mxu1 %v1178_v0 }
  0x74   :  { %829 = vmatprep.subr.mxu0 %v1178_v0  ;;  %847 = vmatpush3.msra.mxu1 %v442_v7 }
  0x75   :  { %830 = vmatpush3.msra.mxu0 %v345_v63  ;;  %848 = vmatprep.subr.mxu1 %v1178_v0 }
  0x76   :  { %831 = vmatprep.subr.mxu0 %v1178_v0  ;;  %849 = vmatpush3.msra.mxu1 %v441_v8 }
  0x77   :  { %832 = vmatpush3.msra.mxu0 %v344_v1  ;;  %850 = vmatprep.subr.mxu1 %v1178_v0 }
  0x78   :  { %833 = vmatprep.subr.mxu0 %v1178_v0  ;;  %851 = vmatpush3.msra.mxu1 %v440_v9 }
  0x79   :  { %834 = vmatpush3.msra.mxu0 %v343_v2  ;;  %852 = vmatprep.subr.mxu1 %v1178_v0 }
  0x7a   :  { %835 = vmatprep.subr.mxu0 %v1178_v0  ;;  %853 = vmatpush3.msra.mxu1 %v439_v10 }
  0x7b   :  { %836 = vmatpush3.msra.mxu0 %v342_v3  ;;  %854 = vmatprep.subr.mxu1 %v1178_v0 }
  0x7c   :  { %875 = vmatprep.subr.mxu0 %v1178_v0  ;;  %855 = vmatpush3.msra.mxu1 %v438_v11 }
  0x7d   :  { %856 = vmatprep.subr.mxu1 %v1178_v0  ;;  %926 = vset.pattern.permute.xlu1 %v1180_v46 }
  0x7e   :  { %857 = vmatpush3.msra.mxu1 %v437_v31  ;;  %927 = vset.pattern.permute.xlu0 %v1180_v46 }
  0x7f   :  { %858 = vmatprep.subr.mxu1 %v1178_v0  ;;  %606 = vperm.xlu1 %926, %v603_v45  }
  0x80   :  { %859 = vmatpush3.msra.mxu1 %v436_v33 }
  0x81   :  { %860 = vmatprep.subr.mxu1 %v1178_v0 }
  0xfa   :  { %v607_v49 = vpop.permute.xlu1 %606 }
 0x119   :  { %v207_v13 = vpop.f32.mrf.mxu0 }
 0x11a   :  { %v208_v14 = vadd.f32 %v683_v12, %v207_v13 }
 0x11b   :  { %v769_v15 = vpop.f32.mrf.mxu0 }
 0x12c   :  { %v325_v37 = vpop.f32.mrf.mxu1 }
 0x12d   :  { %v326_v38 = vadd.f32 %v685_v36, %v325_v37  ;;  %v435_v36 = vld [vmem:[#allocation9 + $0x28] sm:$0xff]  ;;  %v519_v37 = vld [vmem:[#allocation12 + $0x10] sm:$0xff] }
 0x12e   :  { %v804_v39 = vpop.f32.mrf.mxu1  ;;  %861 = vmatpush3.msra.mxu1 %v435_v36 }
 0x12f   :  { %v330_v40 = vsel %vm329_vm2, %v326_v38, -inf  ;;  %862 = vmatprep.subr.mxu1 %v1178_v0  ;;  %v518_v39 = vld [vmem:[#allocation12 + $0x8] sm:$0xff] }
 0x130   :  { %331 = vmax.xlane.f32.xlu0 %v330_v40  ;;  %v433_v40 = vld [vmem:[#allocation9 + $0x18] sm:$0xff] }
 0x1b9   :  { %v332_v53 = vpop.xlane.xlu0 %331 }
 0x1ba   :  { %v333_v54 = vsub.f32 %v326_v38, %v332_v53  ;;  %v434_v38 = vld [vmem:[#allocation9 + $0x20] sm:$0xff] }
 0x1bb   :  { %863 = vmatpush3.msra.mxu1 %v434_v38 }
 0x1bc   :  { %v334_v55 = vmul.f32 1.442695, %v333_v54  ;;  %864 = vmatprep.subr.mxu1 %v1178_v0 }
 0x1bd   :  { %865 = vmatpush3.msra.mxu1 %v433_v40 }
 0x1be   :  { %928 = vpow2.f32 %v334_v55  ;;  %866 = vmatprep.subr.mxu1 %v1178_v0 }
 0x1bf   :  { %930 = vtanh.f32 %v208_v14  ;;  %867 = vmatpush3.msra.mxu1 %v432_v42 }
 0x1c0   :  { %868 = vmatprep.subr.mxu1 %v1178_v0 }
 0x1c1   :  { %869 = vmatpush3.msra.mxu1 %v431_v43 }
 0x1c2   :  { %870 = vmatprep.subr.mxu1 %v1178_v0 }
 0x1c3   :  { %871 = vmatpush3.msra.mxu1 %v430_v44 }
 0x1cb   :  { %v1344_v56 = vpop.eup %928 }
 0x1cc   :  { %v336_v57 = vsel %vm329_vm2, %v1344_v56, 0.0  ;;  %v931_v16 = vpop.eup %930 }
 0x1cd   :  { %337 = vadd.xlane.f32.xlu0 %v336_v57  ;;  %212 = vst [vmem:[#allocation20] sm:$0x3] %v931_v16 }
 0x256   :  { %v338_v17 = vpop.xlane.xlu0 %337 }
 0x257   :  { %932 = vrcp.f32 %v338_v17 }
 0x264   :  { %v933_v18 = vpop.eup %932 }
 0x265   :  { %v340_v19 = vmul.f32 %v933_v18, %v1344_v56 }
 0x267   :  { %838 = vmatmul.mubr.f32.vlgmr.msra.gmra.mxu0 %v340_v19  ;;  %341 = vst [vmem:[#allocation14] sm:$0x3] %v340_v19 }
 0x268   :  { %876 = vmatpush3.msra.mxu0 %v532_v20  ;;  %907 = vmatprep.mubr.msk.f32.mxu0 %vm1179_vm0, %v1178_v0 }
 0x269   :  { %877 = vmatprep.subr.mxu0 %v1178_v0 }
 0x26a   :  { %878 = vmatpush3.msra.mxu0 %v531_v21 }
 0x26b   :  { %879 = vmatprep.subr.mxu0 %v1178_v0 }
 0x26c   :  { %880 = vmatpush3.msra.mxu0 %v530_v22 }
 0x26d   :  { %881 = vmatprep.subr.mxu0 %v1178_v0 }
 0x26e   :  { %882 = vmatpush3.msra.mxu0 %v529_v23 }
 0x26f   :  { %883 = vmatprep.subr.mxu0 %v1178_v0 }
 0x270   :  { %884 = vmatpush3.msra.mxu0 %v528_v24 }
 0x271   :  { %885 = vmatprep.subr.mxu0 %v1178_v0 }
 0x272   :  { %886 = vmatpush3.msra.mxu0 %v527_v25 }
 0x273   :  { %887 = vmatprep.subr.mxu0 %v1178_v0 }
 0x274   :  { %888 = vmatpush3.msra.mxu0 %v526_v26 }
 0x275   :  { %889 = vmatprep.subr.mxu0 %v1178_v0 }
 0x276   :  { %890 = vmatpush3.msra.mxu0 %v525_v27 }
 0x277   :  { %891 = vmatprep.subr.mxu0 %v1178_v0 }
 0x278   :  { %892 = vmatpush3.msra.mxu0 %v524_v28 }
 0x279   :  { %893 = vmatprep.subr.mxu0 %v1178_v0 }
 0x27a   :  { %894 = vmatpush3.msra.mxu0 %v523_v29 }
 0x27b   :  { %895 = vmatprep.subr.mxu0 %v1178_v0 }
 0x27c   :  { %896 = vmatpush3.msra.mxu0 %v522_v30 }
 0x27d   :  { %897 = vmatprep.subr.mxu0 %v1178_v0 }
 0x27e   :  { %898 = vmatpush3.msra.mxu0 %v521_v32 }
 0x27f   :  { %899 = vmatprep.subr.mxu0 %v1178_v0 }
 0x280   :  { %900 = vmatpush3.msra.mxu0 %v520_v34 }
 0x281   :  { %901 = vmatprep.subr.mxu0 %v1178_v0 }
 0x282   :  { %902 = vmatpush3.msra.mxu0 %v519_v37 }
 0x283   :  { %903 = vmatprep.subr.mxu0 %v1178_v0 }
 0x284   :  { %904 = vmatpush3.msra.mxu0 %v518_v39 }
 0x285   :  { %905 = vmatprep.subr.mxu0 %v1178_v0 }
 0x286   :  { %906 = vmatpush3.msra.mxu0 %v517_v41 }
 0x287   :  { %908 = vmatmul.mubr.f32.vlgmr.msra.gmra.mxu0 %v1317_v35 }
 0x327   :  { %v424_v47 = vpop.f32.mrf.mxu0 }
 0x328   :  { %934 = vtanh.f32 %v424_v47 }
 0x329   :  { %v839_v48 = vpop.f32.mrf.mxu0 }
 0x335   :  { %v935_v35 = vpop.eup %934 }
 0x336   :  { %429 = vst [vmem:[#allocation15] sm:$0x3] %v935_v35  ;;  %873 = vmatmul.mubr.f32.vlgmr.msra.gmra.mxu1 %v935_v35 }
 0x347   :  { %v599_v50 = vpop.f32.mrf.mxu0 }
 0x348   :  { %v609_v51 = vmul.f32 %v607_v49, %v599_v50 }
 0x349   :  { %v909_v0 = vpop.f32.mrf.mxu0 }
 0x34a   :  { %610 = vst [vmem:[#allocation18] sm:$0x3] %v609_v51 }
 0x34b   :  { %1067 = shalt.err (!%p1064_p6)
}
 0x34c   :  { %630 = dma.vmem_to_hbm [thread:$0]  %s628_s3, 32, %s1423_s11, [#allocation16]  }
 0x34d   :  { %s1076_s16 = scalar_lea.vmem %s648_s30, 32  ;;  %p1081_p8 = scmp.lt.s32.totalorder %s648_s30, %s648_s30 }
 0x34e   :  { %p1077_p7 = scmp.ne.s32.totalorder %s648_s30, %s1076_s16  ;;  %p1082_p9 = scmp.lt.s32.totalorder %s1076_s16, %s1076_s16 }
 0x350   :  { %p1083_p10 = por %p1082_p9, %p1081_p8 }
 0x352   :  { %p1084_p11 = pnand %p1083_p10, %p1077_p7 }
 0x354   :  { %1087 = shalt.err (!%p1084_p11)
}
 0x355   :  { %650 = dma.vmem_to_hbm [thread:$0]  %s648_s30, 32, %s1425_s13, [#allocation19]  }
 0x356   :  { %s1183_s21 = smov [#allocation14]  }
 0x357   :  { %s617_s22 = sshll.u32 %s1183_s21, 4  ;;  %s618_s22 = int_to_ptr.vmem [resolvable:$true] %s617_s22 }
 0x358   :  { %s1096_s0 = scalar_lea.vmem %s618_s22, 32  ;;  %p1101_p13 = scmp.lt.s32.totalorder %s618_s22, %s618_s22 }
 0x359   :  { %p1097_p12 = scmp.ne.s32.totalorder %s618_s22, %s1096_s0  ;;  %p1102_p0 = scmp.lt.s32.totalorder %s1096_s0, %s1096_s0 }
 0x35b   :  { %p1103_p1 = por %p1102_p0, %p1101_p13 }
 0x35d   :  { %p1104_p2 = pnand %p1103_p1, %p1097_p12 }
 0x35f   :  { %1107 = shalt.err (!%p1104_p2)
}
 0x360   :  { %620 = dma.vmem_to_hbm [thread:$0]  %s618_s22, 32, %s1422_s10, [#allocation5]  }
 0x361   :  { %s1184_s24 = smov [#allocation20]  }
 0x362   :  { %s657_s5 = sshll.u32 %s1184_s24, 4  ;;  %s658_s5 = int_to_ptr.vmem [resolvable:$true] %s657_s5 }
 0x363   :  { %s1116_s25 = scalar_lea.vmem %s658_s5, 32  ;;  %p1121_p4 = scmp.lt.s32.totalorder %s658_s5, %s658_s5 }
 0x364   :  { %p1117_p3 = scmp.ne.s32.totalorder %s658_s5, %s1116_s25  ;;  %p1122_p5 = scmp.lt.s32.totalorder %s1116_s25, %s1116_s25 }
 0x366   :  { %p1123_p6 = por %p1122_p5, %p1121_p4 }
 0x368   :  { %p1124_p7 = pnand %p1123_p6, %p1117_p3 }
 0x36a   :  { %1127 = shalt.err (!%p1124_p7)
}
 0x36b   :  { %660 = dma.vmem_to_hbm [thread:$0]  %s658_s5, 32, %s1426_s14, [#allocation19]  }
 0x36c   :  { %s1185_s7 = smov [#allocation17]  }
 0x36d   :  { %s637_s9 = sshll.u32 %s1185_s7, 4  ;;  %s638_s9 = int_to_ptr.vmem [resolvable:$true] %s637_s9 }
 0x36e   :  { %s1136_s10 = scalar_lea.vmem %s638_s9, 32  ;;  %p1141_p9 = scmp.lt.s32.totalorder %s638_s9, %s638_s9 }
 0x36f   :  { %p1137_p8 = scmp.ne.s32.totalorder %s638_s9, %s1136_s10  ;;  %p1142_p10 = scmp.lt.s32.totalorder %s1136_s10, %s1136_s10 }
 0x371   :  { %p1143_p11 = por %p1142_p10, %p1141_p9 }
 0x373   :  { %p1144_p12 = pnand %p1143_p11, %p1137_p8 }
 0x3f6   :  { %v512_v52 = vpop.f32.mrf.mxu1 }
 0x3f7   :  { %516 = vst [vmem:[#allocation17] sm:$0x3] %v512_v52 }
 0x3f8   :  { %v874_v53 = vpop.f32.mrf.mxu1 }
 0x3f9   :  { %1147 = shalt.err (!%p1144_p12)
}
 0x3fa   :  { %640 = dma.vmem_to_hbm [thread:$0]  %s638_s9, 32, %s1424_s12, [#allocation16]  }
 0x3fb   :  { %1164 = dma.done.wait [#allocation5], 32  }
 0x3fc   :  { %1165 = vsyncadd [#allocation5], 4294967264 }
 0x3fd   :  { %1166 = dma.done.wait [#allocation16], 64  }
 0x3fe   :  { %1167 = vsyncadd [#allocation16], 4294967232 }
 0x3ff   :  { %1168 = dma.done.wait [#allocation19], 64  }
 0x400   :  { %1169 = vsyncadd [#allocation19], 4294967232 }
 0x401   :  { %676 = vsyncpa [#allocation4], 1 }
 0x402   :  { %677 = vsyncpa [#allocation7], 1 }
 0x403   :  { %678 = vsyncpa [#allocation10], 1 }
 0x404   :  { %679 = vsyncpa [#allocation13], 1 }
 0x405   :  { %680 = vsyncpa [#allocation5], 1 }
 0x406   :  { %681 = vsyncpa [#allocation16], 1 }
 0x407   :  { %682 = vsyncpa [#allocation19], 1 }

</bundles_post_ra>
